<compile_context>
chip_gen: v7x
topology: tpu7x:2x2x1
jax: 0.10.0
libtpu: 0.0.40
codegen_flags: <defaults>
</compile_context>

<pallas_src>
import jax
import jax.numpy as jnp
from jax.experimental import pallas as pl
from jax.experimental.pallas import tpu as pltpu


def _roi_rmse_kernel(out_ref, tgt_ref, sum_ref, cnt_ref, sum_sc, cnt_sc):
    t = pl.program_id(1)

    # Reset the per-batch running accumulators at the first spatial tile.
    @pl.when(t == 0)
    def _():
        sum_sc[0] = jnp.float32(0.0)
        cnt_sc[0] = jnp.int32(0)

    # Native-dtype loads, upcast in VMEM.
    o = out_ref[...].astype(jnp.float32)          # (1, C, tile_L)
    g = tgt_ref[...].astype(jnp.float32)          # (1, C, tile_L)

    # ROI mask from channel 1 of the target, broadcast over channels.
    mask = g[:, 1:2, :] == 0                      # (1, 1, tile_L)

    diff = o - g
    d2 = diff * diff                              # (output - target) ** 2
    nz = jnp.logical_and(mask, d2 != 0.0)         # single predicate pass

    sum_sc[0] = sum_sc[0] + jnp.sum(jnp.where(nz, d2, 0.0))
    cnt_sc[0] = cnt_sc[0] + jnp.sum(nz.astype(jnp.int32))

    # Emit per-batch partials (broadcast over the aligned (8,128) tile;
    # wrapper reads element [:, 0, 0]).
    @pl.when(t == pl.num_programs(1) - 1)
    def _():
        sum_ref[...] = jnp.zeros_like(sum_ref) + sum_sc[0]
        cnt_ref[...] = jnp.zeros_like(cnt_ref) + cnt_sc[0]


def roi_rmse_loss_pallas(output, target, *, target_block_bytes=1 << 20):
    assert output.shape == target.shape
    N, C, H, W = output.shape
    assert C >= 2, "ROI mask is taken from channel 1 of the target"

    L = H * W
    itemsize = max(jnp.dtype(output.dtype).itemsize,
                   jnp.dtype(target.dtype).itemsize)

    # ~1 MiB per input buffer, lane-aligned (multiple of 128), capped at L.
    lanes = max(128, (target_block_bytes // (C * itemsize)) // 128 * 128)
    lanes = min(lanes, pl.cdiv(L, 128) * 128)
    L_pad = pl.cdiv(L, lanes) * lanes
    T = L_pad // lanes

    out2 = output.reshape(N, C, L)
    tgt2 = target.reshape(N, C, L)
    if L_pad != L:
        # Zero-padding is exact: err == 0 there and zeros are not counted.
        pad = ((0, 0), (0, 0), (0, L_pad - L))
        out2 = jnp.pad(out2, pad)
        tgt2 = jnp.pad(tgt2, pad)

    bytes_accessed = (
        N * C * L_pad * (jnp.dtype(output.dtype).itemsize
                         + jnp.dtype(target.dtype).itemsize)
        + 2 * N * 8 * 128 * 4
    )
    cost = pl.CostEstimate(
        flops=6 * N * C * L_pad, transcendentals=0,
        bytes_accessed=bytes_accessed,
    )

    sums, cnts = pl.pallas_call(
        _roi_rmse_kernel,
        out_shape=(
            jax.ShapeDtypeStruct((N, 8, 128), jnp.float32),
            jax.ShapeDtypeStruct((N, 8, 128), jnp.int32),
        ),
        grid_spec=pltpu.PrefetchScalarGridSpec(
            num_scalar_prefetch=0,
            grid=(N, T),
            in_specs=[
                pl.BlockSpec((1, C, lanes), lambda n, t: (n, 0, t)),
                pl.BlockSpec((1, C, lanes), lambda n, t: (n, 0, t)),
            ],
            out_specs=[
                pl.BlockSpec((1, 8, 128), lambda n, t: (n, 0, 0)),
                pl.BlockSpec((1, 8, 128), lambda n, t: (n, 0, 0)),
            ],
            scratch_shapes=[
                pltpu.SMEM((1,), jnp.float32),   # running sum (per batch)
                pltpu.SMEM((1,), jnp.int32),     # running nonzero count
            ],
        ),
        compiler_params=pltpu.CompilerParams(
            dimension_semantics=("parallel", "arbitrary"),
            vmem_limit_bytes=32 << 20,
        ),
        cost_estimate=cost,
    )(out2, tgt2)

    total_sum = jnp.sum(sums[:, 0, 0])
    total_cnt = jnp.sum(cnts[:, 0, 0].astype(jnp.float32))
    # Division by zero -> NaN matches the PyTorch reference when no nonzero error exists.
    return jnp.sqrt(total_sum / total_cnt)


def roi_rmse_loss_ref(output, target):
    mask = (target[:, 1:2, :, :] == 0)
    err = jnp.where(mask, (output.astype(jnp.float32)
                           - target.astype(jnp.float32)) ** 2, 0.0)
    s = jnp.sum(err)
    cnt = jnp.sum(err != 0).astype(jnp.float32)
    return jnp.sqrt(s / cnt)


if __name__ == "__main__":
    key = jax.random.PRNGKey(0)
    k1, k2, k3 = jax.random.split(key, 3)

    N, C, H, W = 2, 4, 16, 16
    output = jax.random.normal(k1, (N, C, H, W), dtype=jnp.float32)
    target = jax.random.normal(k2, (N, C, H, W), dtype=jnp.float32)
    # Make channel-1 of target contain exact zeros on part of the spatial grid
    # so the ROI mask is non-trivial.
    zero_mask = jax.random.bernoulli(k3, 0.5, (N, 1, H, W))
    target = target.at[:, 1:2, :, :].set(
        jnp.where(zero_mask, 0.0, target[:, 1:2, :, :])
    )

    got = jax.block_until_ready(roi_rmse_loss_pallas(output, target))
    want = jax.block_until_ready(roi_rmse_loss_ref(output, target))

    assert jnp.allclose(got, want, rtol=1e-5, atol=1e-5), (got, want)
    print("KERNEL_OK")
</pallas_src>

<mosaic_0001>
module attributes {stable_mosaic.version = 11 : i64} {
  func.func @_roi_rmse_kernel(%arg0: i32, %arg1: i32, %arg2: memref<1x4x256xf32, #tpu.memory_space<vmem>>, %arg3: memref<1x4x256xf32, #tpu.memory_space<vmem>>, %arg4: memref<1x8x128xf32, #tpu.memory_space<vmem>>, %arg5: memref<1x8x128xi32, #tpu.memory_space<vmem>>, %arg6: memref<1xf32, #tpu.memory_space<smem>>, %arg7: memref<1xi32, #tpu.memory_space<smem>>) attributes {dimension_semantics = [#tpu.dimension_semantics<parallel>, #tpu.dimension_semantics<arbitrary>], iteration_bounds = array<i64: 2, 1>, scalar_prefetch = 0 : i64, scratch_operands = 2 : i64, tpu.core_type = #tpu.core_type<tc>, window_params = [{transform_indices = @transform_0, window_bounds = array<i64: 1, 4, 256>}, {transform_indices = @transform_1, window_bounds = array<i64: 1, 4, 256>}, {transform_indices = @transform_2, window_bounds = array<i64: 1, 8, 128>}, {transform_indices = @transform_3, window_bounds = array<i64: 1, 8, 128>}]} {
    %c0_i32 = arith.constant 0 : i32
    %0 = arith.cmpi eq, %arg1, %c0_i32 : i32
    %1 = arith.extui %0 : i1 to i32
    %c0_i32_0 = arith.constant 0 : i32
    %2 = arith.cmpi ne, %1, %c0_i32_0 : i32
    scf.if %2 {
      %cst_16 = arith.constant 0.000000e+00 : f32
      %c0_17 = arith.constant 0 : index
      %34 = memref.load %arg6[%c0_17] : memref<1xf32, #tpu.memory_space<smem>>
      memref.store %cst_16, %arg6[%c0_17] : memref<1xf32, #tpu.memory_space<smem>>
      %c0_i32_18 = arith.constant 0 : i32
      %c0_19 = arith.constant 0 : index
      %35 = memref.load %arg7[%c0_19] : memref<1xi32, #tpu.memory_space<smem>>
      memref.store %c0_i32_18, %arg7[%c0_19] : memref<1xi32, #tpu.memory_space<smem>>
    } else {
    }
    %c0 = arith.constant 0 : index
    %c0_1 = arith.constant 0 : index
    %c0_2 = arith.constant 0 : index
    %3 = vector.load %arg2[%c0, %c0_1, %c0_2] : memref<1x4x256xf32, #tpu.memory_space<vmem>>, vector<1x4x256xf32>
    %c0_3 = arith.constant 0 : index
    %c0_4 = arith.constant 0 : index
    %c0_5 = arith.constant 0 : index
    %4 = vector.load %arg3[%c0_3, %c0_4, %c0_5] : memref<1x4x256xf32, #tpu.memory_space<vmem>>, vector<1x4x256xf32>
    %5 = vector.extract_strided_slice %4 {offsets = [0, 1, 0], sizes = [1, 1, 256], strides = [1, 1, 1]} : vector<1x4x256xf32> to vector<1x1x256xf32>
    %cst = arith.constant 0.000000e+00 : f32
    %6 = vector.broadcast %cst : f32 to vector<1x1x256xf32>
    %7 = arith.cmpf oeq, %5, %6 : vector<1x1x256xf32>
    %8 = arith.subf %3, %4 : vector<1x4x256xf32>
    %9 = arith.mulf %8, %8 : vector<1x4x256xf32>
    %cst_6 = arith.constant 0.000000e+00 : f32
    %10 = vector.broadcast %cst_6 : f32 to vector<1x4x256xf32>
    %11 = arith.cmpf one, %9, %10 : vector<1x4x256xf32>
    %12 = vector.broadcast %7 : vector<1x1x256xi1> to vector<1x4x256xi1>
    %13 = arith.andi %12, %11 : vector<1x4x256xi1>
    %c0_7 = arith.constant 0 : index
    %14 = memref.load %arg6[%c0_7] : memref<1xf32, #tpu.memory_space<smem>>
    %cst_8 = arith.constant 0.000000e+00 : f32
    %15 = vector.broadcast %cst_8 : f32 to vector<1x4x256xf32>
    %16 = arith.select %13, %9, %15 : vector<1x4x256xi1>, vector<1x4x256xf32>
    %17 = vector.shape_cast %16 : vector<1x4x256xf32> to vector<1x1x4x256xf32>
    %cst_9 = arith.constant dense<0.000000e+00> : vector<1xf32>
    %18 = vector.multi_reduction <add>, %17, %cst_9 [1, 2, 3] : vector<1x1x4x256xf32> to vector<1xf32>
    %19 = vector.shape_cast %18 : vector<1xf32> to vector<1x1x1x1xf32>
    %20 = vector.extract %19[0, 0, 0, 0] : f32 from vector<1x1x1x1xf32>
    %21 = arith.addf %14, %20 : f32
    %c0_10 = arith.constant 0 : index
    %22 = memref.load %arg6[%c0_10] : memref<1xf32, #tpu.memory_space<smem>>
    memref.store %21, %arg6[%c0_10] : memref<1xf32, #tpu.memory_space<smem>>
    %c0_11 = arith.constant 0 : index
    %23 = memref.load %arg7[%c0_11] : memref<1xi32, #tpu.memory_space<smem>>
    %24 = arith.extui %13 : vector<1x4x256xi1> to vector<1x4x256xi32>
    %25 = vector.shape_cast %24 : vector<1x4x256xi32> to vector<1x1x4x256xi32>
    %cst_12 = arith.constant dense<0> : vector<1xi32>
    %26 = vector.multi_reduction <add>, %25, %cst_12 [1, 2, 3] : vector<1x1x4x256xi32> to vector<1xi32>
    %27 = vector.shape_cast %26 : vector<1xi32> to vector<1x1x1x1xi32>
    %28 = vector.extract %27[0, 0, 0, 0] : i32 from vector<1x1x1x1xi32>
    %29 = arith.addi %23, %28 : i32
    %c0_13 = arith.constant 0 : index
    %30 = memref.load %arg7[%c0_13] : memref<1xi32, #tpu.memory_space<smem>>
    memref.store %29, %arg7[%c0_13] : memref<1xi32, #tpu.memory_space<smem>>
    %c0_i32_14 = arith.constant 0 : i32
    %31 = arith.cmpi eq, %arg1, %c0_i32_14 : i32
    %32 = arith.extui %31 : i1 to i32
    %c0_i32_15 = arith.constant 0 : i32
    %33 = arith.cmpi ne, %32, %c0_i32_15 : i32
    scf.if %33 {
      %cst_16 = arith.constant 0.000000e+00 : f32
      %34 = vector.broadcast %cst_16 : f32 to vector<1x8x128xf32>
      %c0_17 = arith.constant 0 : index
      %35 = memref.load %arg6[%c0_17] : memref<1xf32, #tpu.memory_space<smem>>
      %36 = vector.broadcast %35 : f32 to vector<1x8x128xf32>
      %37 = arith.addf %34, %36 : vector<1x8x128xf32>
      %c0_18 = arith.constant 0 : index
      %c0_19 = arith.constant 0 : index
      %c0_20 = arith.constant 0 : index
      %38 = vector.load %arg4[%c0_18, %c0_19, %c0_20] : memref<1x8x128xf32, #tpu.memory_space<vmem>>, vector<1x8x128xf32>
      tpu.vector_store %arg4[%c0_18, %c0_19, %c0_20], %37 {strides = array<i32>} : memref<1x8x128xf32, #tpu.memory_space<vmem>>, vector<1x8x128xf32>,
      %c0_i32_21 = arith.constant 0 : i32
      %39 = vector.broadcast %c0_i32_21 : i32 to vector<1x8x128xi32>
      %c0_22 = arith.constant 0 : index
      %40 = memref.load %arg7[%c0_22] : memref<1xi32, #tpu.memory_space<smem>>
      %41 = vector.broadcast %40 : i32 to vector<1x8x128xi32>
      %42 = arith.addi %39, %41 : vector<1x8x128xi32>
      %c0_23 = arith.constant 0 : index
      %c0_24 = arith.constant 0 : index
      %c0_25 = arith.constant 0 : index
      %43 = vector.load %arg5[%c0_23, %c0_24, %c0_25] : memref<1x8x128xi32, #tpu.memory_space<vmem>>, vector<1x8x128xi32>
      tpu.vector_store %arg5[%c0_23, %c0_24, %c0_25], %42 {strides = array<i32>} : memref<1x8x128xi32, #tpu.memory_space<vmem>>, vector<1x8x128xi32>,
    } else {
    }
    return
  }
  func.func @transform_0(%arg0: i32, %arg1: i32) -> (i32, i32, i32) {
    %c0_i32 = arith.constant 0 : i32
    %c0_i32_0 = arith.constant 0 : i32
    return %arg0, %c0_i32, %arg1 : i32, i32, i32
  }
  func.func @transform_1(%arg0: i32, %arg1: i32) -> (i32, i32, i32) {
    %c0_i32 = arith.constant 0 : i32
    %c0_i32_0 = arith.constant 0 : i32
    return %arg0, %c0_i32, %arg1 : i32, i32, i32
  }
  func.func @transform_2(%arg0: i32, %arg1: i32) -> (i32, i32, i32) {
    %c0_i32 = arith.constant 0 : i32
    %c0_i32_0 = arith.constant 0 : i32
    %c0_i32_1 = arith.constant 0 : i32
    return %arg0, %c0_i32, %c0_i32_0 : i32, i32, i32
  }
  func.func @transform_3(%arg0: i32, %arg1: i32) -> (i32, i32, i32) {
    %c0_i32 = arith.constant 0 : i32
    %c0_i32_0 = arith.constant 0 : i32
    %c0_i32_1 = arith.constant 0 : i32
    return %arg0, %c0_i32, %c0_i32_0 : i32, i32, i32
  }
}

</mosaic_0001>

<bundles_post_ra>
// kernel: tpu_custom_call.1
= control target key start
LH: loop header
LB: loop body
LE: loop exit
PB: predicated region body
PF: predicated region fallthrough
CT: control target
= control target key end

     0   :  { %9 = vsyncpa [#allocation5], 0  ;;  %s1091_s0 = inlined_call_operand.hbm [shape: f32[2,4,256], index: 0, kind: input, shape index: {}]   ;;  %s1092_s1 = inlined_call_operand.hbm [shape: f32[2,4,256], index: 1, kind: input, shape index: {}]   ;;  %s1093_s2 = inlined_call_operand.hbm [shape: f32[2,8,128], index: 2, kind: output, shape index: {0}]   ;;  %s1094_s3 = inlined_call_operand.hbm [shape: s32[2,8,128], index: 3, kind: output, shape index: {1}]  }
   0x1   :  { %11 = vsyncpa [#allocation5 + $0x1], 0 }
   0x2   :  { %12 = vsyncpa [#allocation8], 0 }
   0x3   :  { %14 = vsyncpa [#allocation8 + $0x1], 0 }
   0x4   :  { %15 = vsyncpa [#allocation6], 0 }
   0x5   :  { %17 = vsyncpa [#allocation6 + $0x1], 0 }
   0x6   :  { %18 = vsyncpa [#allocation11], 0 }
   0x7   :  { %20 = vsyncpa [#allocation11 + $0x1], 0  ;;  %s832_s12 = smov 0   ;;  %s834_s13 = smov 0  }
   0x8   :  { %s836_s14 = smov 0   ;;  %s838_s15 = smov 0  }
   0x9   :  { %s840_s16 = smov 0   ;;  %s842_s17 = smov 0  }
   0xa LB: > { %s527_s18 = sadd.s32 4294967295, %s805_s17   ;;  %s528_s19 = sadd.s32 4294967294, %s805_s17   ;;  %s805_s17 = sphi %s842_s17, %s26_s17   ;;  %s801_s16 = sphi %s840_s16, %s1114_s16   ;;  %s797_s15 = sphi %s838_s15, %s1113_s15   ;;  %s793_s14 = sphi %s836_s14, %s1112_s14   ;;  %s789_s13 = sphi %s834_s13, %s1111_s13   ;;  %s785_s12 = sphi %s832_s12, %s1110_s12  }
   0xb   : > { %s38_s20 = sadd.s32 1, %s801_s16  ;;  %s47_s21 = sadd.s32 1, %s793_s14 }
   0xc   : > { %p40_p0 = scmp.ge.s32.totalorder %s38_s20, 2  ;;  %p54_p1 = scmp.ne.s32.totalorder %s793_s14, %s789_s13 }
   0xd   : > { %p55_p2 = scmp.eq.s32.totalorder %s805_s17, 0  ;;  %p60_p3 = scmp.ne.s32.totalorder %s789_s13, %s785_s12 }
   0xe   : > { %s1116_s20 = smov (%p40_p0, %s38_s20), 0  ;;  %p61_p5 = scmp.eq.s32.totalorder %s527_s18, 0 }
   0xf   : > { %p873_p4 = por %p55_p2, %p54_p1  ;;  %s42_s23 = ssub.s32 %s801_s16, %s1116_s20 }
  0x10   : > { %p112_p6 = scmp.eq.s32.totalorder %s527_s18, 1  ;;  %p45_p7 = scmp.eq.s32.totalorder %s42_s23, 0 }
  0x11   : > { %p879_p8 = por %p61_p5, %p60_p3  ;;  %p118_p10 = scmp.eq.s32.totalorder %s528_s19, 1 }
  0x12   : > { %p883_p9 = por %p112_p6, %p54_p1  ;;  %p576_p13 = scmp.lt.s32.totalorder %s805_s17, 2 }
  0x13   : > { %s1098_s24 = scalar_select %p879_p8, 1, 0 }
  0x14   : > { %s1099_s25 = scalar_select %p883_p9, 1, 0 }
  0x15   : > { %s888_s26 = scalar_select %p45_p7, %s793_s14, %s47_s21  }
  0x16   : > { %p890_p11 = por %p118_p10, %p60_p3  ;;  %s897_s28 = sand.u32 1, %s793_s14  }
  0x17   : > { %s531_s29 = sshll.u32 %s897_s28, 3  ;;  %s548_s30 = sshll.u32 %s801_s16, 7 }
  0x18   : > { %s1100_s27 = scalar_select %p890_p11, 1, 0 }
  0x19   : > { %s906_s6 = scalar_lea.hbm %s1091_s0, %s548_s30  ;;  %s168_s7 = scalar_lea.vmem [#allocation4], %s531_s29 }
  0x1a   : > { %s178_s8 = sshll.u32 %s168_s7, 4  ;;  %p914_p0 = pnand %p576_p13, %p873_p4  ;;  %s910_s8 = int_to_ptr.vmem [resolvable:$true] %s178_s8 }
  0x1b   : > { %s165_s10 = scalar_lea.sflag [#allocation5], %s897_s28  ;;  %s627_s11 = scalar_lea.hbm %s906_s6, 128 }
  0x1c   : > { %p628_p3 = scmp.ne.s32.totalorder %s906_s6, %s627_s11  ;;  %p629_p5 = pneg %p914_p0 }
  0x1d   : > { %s632_s21 = scalar_lea.hbm %s1091_s0, 256  ;;  %p633_p4 = scmp.lt.u32.totalorder %s906_s6, %s1091_s0 }
  0x1e   : > { %p630_p6 = pnand %p629_p5, %p628_p3  ;;  %p634_p10 = scmp.lt.u32.totalorder %s632_s21, %s627_s11 }
  0x1f   : > { %p636_p12 = scmp.lt.u32.totalorder %s627_s11, %s906_s6 }
  0x20   : > { %p631_p7 = pneg %p630_p6  ;;  %p635_p13 = por %p634_p10, %p633_p4 }
  0x22   : > { %p637_p1 = por %p636_p12, %p635_p13 }
  0x24   : > { %p638_p2 = pnand %p637_p1, %p631_p7 }
  0x26   : > { %641 = shalt.err (!%p638_p2)
}
  0x27   : > { %s642_s4 = scalar_lea.vmem %s910_s8, 128  ;;  %s807_s5 = smov [#allocation4]  }
  0x28   : > { %p643_p3 = scmp.ne.s32.totalorder %s910_s8, %s642_s4  ;;  %s647_s7 = sshll.u32 %s807_s5, 4  ;;  %s648_s7 = int_to_ptr.vmem [resolvable:$false] %s647_s7 }
  0x29   : > { %s649_s18 = scalar_lea.vmem %s648_s7, 256  ;;  %p650_p9 = scmp.lt.s32.totalorder %s910_s8, %s648_s7 }
  0x2a   : > { %p645_p6 = pnand %p643_p3, %p629_p5  ;;  %p651_p4 = scmp.lt.s32.totalorder %s649_s18, %s642_s4 }
  0x2c   : > { %p646_p11 = pneg %p645_p6  ;;  %p652_p10 = por %p651_p4, %p650_p9 }
  0x2e   : > { %p653_p12 = pnand %p652_p10, %p646_p11 }
  0x30   : > { %656 = shalt.err (!%p653_p12)
}
  0x31   : > { %565 = dma.hbm_to_vmem [thread:$0]  (!%p914_p0), %s906_s6, 128, %s910_s8, %s165_s10  }
  0x32   : > { %p1102_p1 = scmp.lt.s32.totalorder %s805_s17, 3  ;;  %p1103_p2 = scmp.ge.s32.totalorder %s805_s17, 1 }
  0x33   : > { %s959_s22 = scalar_lea.hbm %s1092_s1, %s548_s30  ;;  %s189_s23 = scalar_lea.vmem [#allocation7], %s531_s29 }
  0x34   : > { %p950_p7 = pnand %p1103_p2, %p1102_p1  ;;  %s199_s4 = sshll.u32 %s189_s23, 4  ;;  %s200_s4 = int_to_ptr.vmem [resolvable:$true] %s199_s4 }
  0x35   : > { %s186_s6 = scalar_lea.sflag [#allocation8], %s897_s28  ;;  %s657_s8 = scalar_lea.hbm %s959_s22, 128 }
  0x36   : > { %s1104_s11 = scalar_select %p950_p7, 1, 0 }
  0x37   : > { %p658_p9 = scmp.ne.s32.totalorder %s959_s22, %s657_s8  ;;  %s662_s30 = scalar_lea.hbm %s1092_s1, 256 }
  0x38   : > { %p663_p3 = scmp.lt.u32.totalorder %s959_s22, %s1092_s1  ;;  %p664_p6 = scmp.lt.u32.totalorder %s662_s30, %s657_s8 }
  0x39   : > { %p660_p11 = pnand %p658_p9, %p629_p5  ;;  %p666_p10 = scmp.lt.u32.totalorder %s657_s8, %s959_s22 }
  0x3a   : > { %p665_p4 = por %p664_p6, %p663_p3 }
  0x3b   : > { %p661_p13 = pneg %p660_p11 }
  0x3c   : > { %p667_p12 = por %p666_p10, %p665_p4 }
  0x3e   : > { %p668_p1 = pnand %p667_p12, %p661_p13 }
  0x40   : > { %671 = shalt.err (!%p668_p1)
}
  0x41   : > { %s672_s28 = scalar_lea.vmem %s200_s4, 128  ;;  %s808_s29 = smov [#allocation7]  }
  0x42   : > { %p673_p2 = scmp.ne.s32.totalorder %s200_s4, %s672_s28  ;;  %s677_s19 = sshll.u32 %s808_s29, 4  ;;  %s678_s19 = int_to_ptr.vmem [resolvable:$false] %s677_s19 }
  0x43   : > { %s679_s21 = scalar_lea.vmem %s678_s19, 256  ;;  %p680_p8 = scmp.lt.s32.totalorder %s200_s4, %s678_s19 }
  0x44   : > { %p675_p9 = pnand %p673_p2, %p629_p5  ;;  %p681_p7 = scmp.lt.s32.totalorder %s679_s21, %s672_s28 }
  0x46   : > { %p676_p11 = pneg %p675_p9  ;;  %p682_p3 = por %p681_p7, %p680_p8 }
  0x48   : > { %p683_p6 = pnand %p682_p3, %p676_p11 }
  0x4a   : > { %686 = shalt.err (!%p683_p6)
}
  0x4b   : > { %568 = dma.hbm_to_vmem [thread:$0]  (!%p914_p0), %s959_s22, 128, %s200_s4, %s186_s6  }
  0x4c   : > { %p1105_p13 = scmp.ne.s32.totalorder %s1104_s11, 0 }
  0x4d   : > { %s986_s23 = sand.u32 (!%p1105_p13), 1, %s789_s13   ;;  %p1106_p8 = scmp.ne.s32.totalorder (!%p1105_p13), %s1098_s24, 0 }
  0x4e   : > { %208 = sbr.rel (%p1105_p13) target bundleno = 349 (0x15d), region = 28  ;;  %s989_s8 = sshll.u32 (!%p1105_p13), %s986_s23, 3 }
  0x4f   : > { %s211_s10 = scalar_lea.sflag (!%p1105_p13), [#allocation5], %s986_s23  ;;  %s214_s5 = scalar_lea.vmem (!%p1105_p13), [#allocation4], %s989_s8 }
  0x55   : > { %768 = dma.done.wait (%p1106_p8), %s211_s10, 128  }
  0x56   : > { %770 = vsyncadd (%p1106_p8), %s211_s10, 4294967168  ;;  %s220_s9 = scalar_lea.sflag [#allocation8], %s986_s23  ;;  %s223_s11 = scalar_lea.vmem [#allocation7], %s989_s8 }
  0x57   : > { %772 = dma.done.wait (%p1106_p8), %s220_s9, 128  }
  0x58   : > { %774 = vsyncadd (%p1106_p8), %s220_s9, 4294967168  ;;  %v273_v0 = vlaneseq  ;;  %v266_v4 = vld [vmem:[%s214_s5] sm:$0xff]  ;;  %v267_v5 = vld [vmem:[%s223_s11] sm:$0xff]  ;;  %v809_v7 = vmov 0   ;;  %vm302_vm2 = vcmask 1043456   ;;  %s544_s24 = sshll.u32 %s797_s15, 7 }
  0x59   : > { %vm268_vm0 = vcmp.eq.f32.partialorder %v267_v5, 0.0  ;;  %v269_v6 = vsub.f32 %v266_v4, %v267_v5  ;;  %s248_s22 = scalar_lea.vmem [#allocation9], %s989_s8  ;;  %s1010_s7 = scalar_lea.hbm %s1093_s2, %s544_s24 }
  0x5a   : > { %v274_v1 = vshrl.u32 %v273_v0, 7  ;;  %v272_v8 = vsel %vm268_vm0, 1, %v809_v7  ;;  %s375_s4 = sshll.u32 %s248_s22, 4  ;;  %s357_s28 = scalar_lea.sflag [#allocation6], %s986_s23  ;;  %s1012_s4 = int_to_ptr.vmem [resolvable:$true] %s375_s4 }
  0x5b   : > { %v270_v9 = vmul.f32 %v269_v6, %v269_v6  ;;  %s687_s29 = scalar_lea.vmem %s1012_s4, 128  ;;  %p1107_p5 = scmp.ne.s32.totalorder %s1099_s25, 0 }
  0x5c   : > { %v275_v2 = vsub.s32 1, %v274_v1  ;;  %v279_v3 = vsub.s32 5, %v274_v1  ;;  %p688_p0 = scmp.ne.s32.totalorder %s1012_s4, %s687_s29  ;;  %s810_s19 = smov [#allocation9]  }
  0x5d   : > { %vm271_vm1 = vcmp.ne.f32.partialorder %v270_v9, 0.0  ;;  %v298_v16 = vcombine.high %v270_v9, %v270_v9  ;;  %s691_s21 = sshll.u32 %s810_s19, 4  ;;  %s692_s21 = int_to_ptr.vmem [resolvable:$false] %s691_s21 }
  0x5e   : > { %v276_v10 = vrot.slane %v272_v8, %v275_v2  ;;  %v280_v11 = vrot.slane %v272_v8, %v279_v3  ;;  %v291_v14 = vsel %vm271_vm1, 1, %v809_v7  ;;  %p689_p7 = pnand %p688_p0, %p1107_p5  ;;  %s693_s10 = scalar_lea.vmem %s692_s21, 256 }
  0x5f   : > { %v292_v15 = vcombine.high %v291_v14, %v291_v14  ;;  %p694_p10 = scmp.lt.s32.totalorder %s1012_s4, %s692_s21  ;;  %p695_p12 = scmp.lt.s32.totalorder %s693_s10, %s687_s29 }
  0x60   : > { %v284_v12 = vrot.slane %v276_v10, %v275_v2  ;;  %v288_v13 = vrot.slane %v280_v11, %v275_v2  ;;  %p690_p4 = pneg %p689_p7 }
  0x61   : > { %vm293_vm6 = vcmp.ne.s32.totalorder %v292_v15, 0  ;;  %p696_p1 = por %p695_p12, %p694_p10 }
  0x62   : > { %vm289_vm3 = vcmp.eq.s32.totalorder %v284_v12, 1  ;;  %vm290_vm4 = vcmp.eq.s32.totalorder %v288_v13, 1 }
  0x63   : > { %vm294_vm5 = vmand %vm289_vm3, %vm271_vm1  ;;  %p697_p2 = pnand %p696_p1, %p690_p4 }
  0x64   : > { %v319_v17 = vsel %vm294_vm5, 1, %v809_v7  ;;  %v300_v18 = vsel %vm294_vm5, %v270_v9, 0.0  ;;  %vm295_vm7 = vmand %vm290_vm4, %vm293_vm6 }
  0x65   : > { %v321_v19 = vsel %vm302_vm2, %v319_v17, 0  ;;  %v303_v20 = vsel %vm302_vm2, %v300_v18, 0.0  ;;  %v320_v21 = vsel %vm295_vm7, 1, %v809_v7  ;;  %v301_v22 = vsel %vm295_vm7, %v298_v16, 0.0 }
  0x66   : > { %v322_v23 = vsel %vm302_vm2, %v320_v21, 0  ;;  %v304_v24 = vsel %vm302_vm2, %v301_v22, 0.0 }
  0x67   : > { %v323_v25 = vadd.s32 %v322_v23, %v321_v19  ;;  %v305_v26 = vadd.f32 %v304_v24, %v303_v20 }
  0x69   : > { %v325_v27 = vshrl.u32 %v323_v25, 16  ;;  %306 = vadd.xlane.f32.xlu1 %v305_v26  ;;  %v324_v28 = vand.u32 65535, %v323_v25 }
  0x6b   : > { %v327_v29 = vcvt.s32.f32 %v325_v27  ;;  %v326_v30 = vcvt.s32.f32 %v324_v28 }
  0x6d   : > { %330 = vadd.xlane.f32.xlu0 %v327_v29 }
  0x71   : > { %328 = vadd.xlane.f32.xlu0 %v326_v30 }
  0xf6   : > { %v307_v31 = vpop.xlane.xlu1 %306 }
  0xf7   : > { %v308_v32 = vrot.slane %v307_v31, 4 }
  0xf9   : > { %v309_v33 = vadd.f32 %v308_v32, %v307_v31 }
  0xfa   : > { %v331_v34 = vpop.xlane.xlu0 %330 }
  0xfb   : > { %v333_v35 = vcvt.f32.s32 %v331_v34  ;;  %v310_v36 = vrot.slane %v309_v33, 2 }
  0xfd   : > { %v311_v37 = vadd.f32 %v310_v36, %v309_v33  ;;  %v334_v39 = vshll.u32 %v333_v35, 16 }
  0xfe   : > { %v329_v38 = vpop.xlane.xlu0 %328 }
  0xff   : > { %v332_v40 = vcvt.f32.s32 %v329_v38  ;;  %v312_v41 = vrot.slane %v311_v37, 1 }
 0x101   : > { %v335_v42 = vadd.s32 %v334_v39, %v332_v40  ;;  %v313_v43 = vadd.f32 %v312_v41, %v311_v37 }
 0x103   : > { %v336_v44 = vrot.slane %v335_v42, 4  ;;  %550 = vpush %v313_v43 }
 0x105   : > { %v337_v45 = vadd.s32 %v336_v44, %v335_v42 }
 0x107   : > { %v338_v46 = vrot.slane %v337_v45, 2 }
 0x109   : > { %v339_v47 = vadd.s32 %v338_v46, %v337_v45 }
 0x10b   : > { %v340_v48 = vrot.slane %v339_v47, 1 }
 0x10d   : > { %v341_v49 = vadd.s32 %v340_v48, %v339_v47 }
 0x10f   : > { %552 = vpush %v341_v49 }
 0x134   : > { %s551_s18 = spop %550 }
 0x135   : > { %v350_v50 = vstv %s551_s18 }
 0x136   : > { %352 = vst [vmem:[%s248_s22] sm:$0xff] %v350_v50 }
 0x137   : > { %700 = shalt.err (!%p697_p2)
}
 0x138   : > { %s701_s5 = scalar_lea.hbm %s1010_s7, 128  ;;  %s705_s22 = scalar_lea.hbm %s1093_s2, 256 }
 0x139   : > { %p702_p9 = scmp.ne.s32.totalorder %s1010_s7, %s701_s5  ;;  %p706_p6 = scmp.lt.u32.totalorder %s1010_s7, %s1093_s2 }
 0x13a   : > { %p707_p13 = scmp.lt.u32.totalorder %s705_s22, %s701_s5  ;;  %p709_p0 = scmp.lt.u32.totalorder %s701_s5, %s1010_s7 }
 0x13b   : > { %p703_p11 = pnand %p702_p9, %p1107_p5 }
 0x13c   : > { %p708_p8 = por %p707_p13, %p706_p6 }
 0x13d   : > { %p704_p3 = pneg %p703_p11 }
 0x13e   : > { %p710_p7 = por %p709_p0, %p708_p8 }
 0x140   : > { %p711_p4 = pnand %p710_p7, %p704_p3 }
 0x142   : > { %714 = shalt.err (!%p711_p4)
}
 0x143   : > { %558 = dma.vmem_to_hbm [thread:$0]  (%p1107_p5), %s1012_s4, 128, %s1010_s7, %s357_s28  }
 0x144   : > { %s255_s18 = scalar_lea.vmem [#allocation10], %s989_s8  ;;  %s553_s19 = spop %552 }
 0x145   : > { %s388_s29 = sshll.u32 %s255_s18, 4  ;;  %s1044_s5 = scalar_lea.hbm %s1094_s3, %s544_s24  ;;  %v354_v51 = vstv %s553_s19  ;;  %s1037_s29 = int_to_ptr.vmem [resolvable:$true] %s388_s29 }
 0x146   : > { %355 = vst [vmem:[%s255_s18] sm:$0xff] %v354_v51  ;;  %s362_s9 = scalar_lea.sflag [#allocation11], %s986_s23  ;;  %s715_s11 = scalar_lea.vmem %s1037_s29, 128 }
 0x147   : > { %p716_p10 = scmp.ne.s32.totalorder %s1037_s29, %s715_s11  ;;  %s811_s8 = smov [#allocation10]  }
 0x148   : > { %s719_s4 = sshll.u32 %s811_s8, 4  ;;  %s720_s4 = int_to_ptr.vmem [resolvable:$false] %s719_s4 }
 0x149   : > { %p717_p12 = pnand %p716_p10, %p1107_p5  ;;  %s721_s7 = scalar_lea.vmem %s720_s4, 256 }
 0x14a   : > { %p722_p2 = scmp.lt.s32.totalorder %s1037_s29, %s720_s4  ;;  %p723_p9 = scmp.lt.s32.totalorder %s721_s7, %s715_s11 }
 0x14b   : > { %p718_p1 = pneg %p717_p12 }
 0x14c   : > { %p724_p11 = por %p723_p9, %p722_p2 }
 0x14e   : > { %p725_p3 = pnand %p724_p11, %p718_p1 }
 0x150   : > { %728 = shalt.err (!%p725_p3)
}
 0x151   : > { %s729_s15 = scalar_lea.hbm %s1044_s5, 128  ;;  %s733_s28 = scalar_lea.hbm %s1094_s3, 256 }
 0x152   : > { %p730_p6 = scmp.ne.s32.totalorder %s1044_s5, %s729_s15  ;;  %p734_p0 = scmp.lt.u32.totalorder %s1044_s5, %s1094_s3 }
 0x153   : > { %p735_p7 = scmp.lt.u32.totalorder %s733_s28, %s729_s15  ;;  %p737_p10 = scmp.lt.u32.totalorder %s729_s15, %s1044_s5 }
 0x154   : > { %p731_p13 = pnand %p730_p6, %p1107_p5 }
 0x155   : > { %p736_p4 = por %p735_p7, %p734_p0 }
 0x156   : > { %p732_p8 = pneg %p731_p13 }
 0x157   : > { %p738_p12 = por %p737_p10, %p736_p4 }
 0x159   : > { %p739_p1 = pnand %p738_p12, %p732_p8 }
 0x15b   : > { %742 = shalt.err (!%p739_p1)
}
 0x15c   : > { %559 = dma.vmem_to_hbm [thread:$0]  (%p1107_p5), %s1037_s29, 128, %s1044_s5, %s362_s9  }
 0x15d PF: > { %s400_s30 = sand.u32 1, %s785_s12   ;;  %p1108_p2 = scmp.ne.s32.totalorder %s1100_s27, 0 }
 0x15e   : > { %p1109_p9 = scmp.ge.s32.totalorder %s805_s17, 2  ;;  %s401_s18 = scalar_lea.sflag [#allocation6], %s400_s30 }
 0x160   : > { %p570_p11 = pnand %p1109_p9, %p1108_p2 }
 0x162   : > { %776 = dma.done.wait (!%p570_p11), %s401_s18, 128  }
 0x163   : > { %778 = vsyncadd (!%p570_p11), %s401_s18, 4294967168  ;;  %s410_s19 = scalar_lea.sflag [#allocation11], %s400_s30 }
 0x164   : > { %780 = dma.done.wait (!%p570_p11), %s410_s19, 128  }
 0x165   : > { %782 = vsyncadd (!%p570_p11), %s410_s19, 4294967168  ;;  %s26_s17 = sadd.s32 1, %s805_s17   ;;  %s1110_s12 = smov %s789_s13 }
 0x166   : > { %p23_p3 = scmp.ge.s32.totalorder %s26_s17, 4   ;;  %s1111_s13 = smov %s793_s14 }
 0x167   : > { %s1112_s14 = smov %s888_s26  ;;  %s1113_s15 = smov %s801_s16 }
 0x168   : > { %s1114_s16 = smov %s1116_s20  ;;  %25 = sbr.rel (!%p23_p3) target bundleno = 10 (0xa), region = 115 }
 0x16f   :  { %415 = vsyncpa [#allocation5], 1 }
 0x170   :  { %417 = vsyncpa [#allocation5 + $0x1], 1 }
 0x171   :  { %418 = vsyncpa [#allocation8], 1 }
 0x172   :  { %420 = vsyncpa [#allocation8 + $0x1], 1 }
 0x173   :  { %421 = vsyncpa [#allocation6], 1 }
 0x174   :  { %423 = vsyncpa [#allocation6 + $0x1], 1 }
 0x175   :  { %424 = vsyncpa [#allocation11], 1 }
 0x176   :  { %426 = vsyncpa [#allocation11 + $0x1], 1 }

</bundles_post_ra>
